<compile_context>
chip_gen: v7x
topology: tpu7x:2x2x1
jax: 0.10.0
libtpu: 0.0.40
codegen_flags: <defaults>
</compile_context>

<pallas_src>
import jax
import jax.numpy as jnp
from jax.experimental import pallas as pl
from jax.experimental.pallas import tpu as pltpu


def mlp_kernel(x_ref, w1_ref, b1_ref, w2_ref, b2_ref, o_ref):
    # x_ref:  (TB, 16)  f32          w1_ref: (16, 32)  bf16   b1_ref: (1, 32)  f32
    # w2_ref: (32, 128) bf16 (cols 10..127 zero)               b2_ref: (1, 128) f32
    # o_ref:  (TB, 128) f32 (lane-dense store; wrapper slices [:, :10])
    x = x_ref[...].astype(w1_ref.dtype)                      # cast to bf16 in-kernel
    h = jnp.dot(x, w1_ref[...], preferred_element_type=jnp.float32)
    h = jnp.maximum(h + b1_ref[...], 0.0)                    # f32 bias + ReLU (VPU)
    y = jnp.dot(h.astype(w2_ref.dtype), w2_ref[...],
                preferred_element_type=jnp.float32)
    o_ref[...] = (y + b2_ref[...]).astype(o_ref.dtype)


def net_forward(x, w1, b1, w2, b2, *, block_b=1024, use_bf16=True):
    """x: (B, 16) f32 -> (B, 10) f32.

    w1: (16, 32), b1: (1, 32), w2: (32, 10), b2: (1, 10)
    (weights stored transposed relative to PyTorch's (out, in) convention).
    """
    B, F_in = x.shape
    H = w1.shape[1]
    N_out = w2.shape[1]
    N_pad = 128                                   # lane-dense output width

    # Batch tile: multiple of 8 (sublane), capped at block_b and at the batch.
    tb = min(block_b, ((B + 7) // 8) * 8)
    Bp = ((B + tb - 1) // tb) * tb                # pad batch to a tile multiple
    if Bp != B:
        x = jnp.pad(x, ((0, Bp - B), (0, 0)))

    # Zero-pad fc2 output dim 10 -> 128 so kernel stores are full-lane.
    w2p = jnp.pad(w2, ((0, 0), (0, N_pad - N_out)))
    b2p = jnp.pad(b2, ((0, 0), (0, N_pad - N_out)))

    mm_dtype = jnp.bfloat16 if use_bf16 else jnp.float32
    w1_mm = w1.astype(mm_dtype)                   # tiny, one-time cast
    w2_mm = w2p.astype(mm_dtype)

    bytes_accessed = (
        Bp * F_in * x.dtype.itemsize                # activations in
        + F_in * H * w1_mm.dtype.itemsize           # w1
        + H * 4                                     # b1
        + H * N_pad * w2_mm.dtype.itemsize          # w2 (padded)
        + N_pad * 4                                 # b2 (padded)
        + Bp * N_pad * 4                            # output
    )

    grid = (Bp // tb,)
    out_padded = pl.pallas_call(
        mlp_kernel,
        out_shape=jax.ShapeDtypeStruct((Bp, N_pad), jnp.float32),
        grid=grid,
        in_specs=[
            pl.BlockSpec((tb, F_in), lambda i: (i, 0)),     # x: batch-tiled
            pl.BlockSpec((F_in, H), lambda i: (0, 0)),      # w1: VMEM-resident
            pl.BlockSpec((1, H), lambda i: (0, 0)),         # b1
            pl.BlockSpec((H, N_pad), lambda i: (0, 0)),     # w2 (padded)
            pl.BlockSpec((1, N_pad), lambda i: (0, 0)),     # b2 (padded)
        ],
        out_specs=pl.BlockSpec((tb, N_pad), lambda i: (i, 0)),
        compiler_params=pltpu.CompilerParams(
            dimension_semantics=("parallel",),              # megacore-friendly
        ),
        cost_estimate=pl.CostEstimate(
            flops=2 * Bp * (F_in * H + H * N_pad),
            transcendentals=0,
            bytes_accessed=bytes_accessed,
        ),
    )(x, w1_mm, b1, w2_mm, b2p)

    return out_padded[:B, :N_out]


def init_params(key):
    """Deterministic init matching torch.nn.Linear shapes:
    fc1: weight (32,16), bias (32,); fc2: weight (10,32), bias (10,).
    Stored transposed for the kernel as (in, out)."""
    k1, k2, k3, k4 = jax.random.split(key, 4)
    lim1 = 1.0 / jnp.sqrt(16.0)
    lim2 = 1.0 / jnp.sqrt(32.0)
    w1 = jax.random.uniform(k1, (16, 32), jnp.float32, -lim1, lim1)
    b1 = jax.random.uniform(k2, (1, 32), jnp.float32, -lim1, lim1)
    w2 = jax.random.uniform(k3, (32, 10), jnp.float32, -lim2, lim2)
    b2 = jax.random.uniform(k4, (1, 10), jnp.float32, -lim2, lim2)
    return w1, b1, w2, b2


def _reference(x, w1, b1, w2, b2, use_bf16=True):
    """Plain-JAX reference with the same bf16-in / f32-accumulate math."""
    mm = jnp.bfloat16 if use_bf16 else jnp.float32
    h = jnp.dot(x.astype(mm), w1.astype(mm),
                preferred_element_type=jnp.float32) + b1
    h = jnp.maximum(h, 0.0)
    y = jnp.dot(h.astype(mm), w2.astype(mm),
                preferred_element_type=jnp.float32) + b2
    return y


if __name__ == "__main__":
    key = jax.random.PRNGKey(0)
    kx, kp = jax.random.split(key)
    w1, b1, w2, b2 = init_params(kp)

    # Small smoke test (single tile, B=8).
    B = 8
    x = jax.random.normal(kx, (B, 16), jnp.float32)
    out = jax.block_until_ready(net_forward(x, w1, b1, w2, b2))
    ref = _reference(x, w1, b1, w2, b2)
    assert out.shape == (B, 10)
    assert jnp.allclose(out, ref, atol=1e-4, rtol=1e-4)
    # Loose check against pure-f32 math (bf16 rounding only).
    ref_f32 = jnp.maximum(x @ w1 + b1, 0.0) @ w2 + b2
    assert jnp.allclose(out, ref_f32, atol=5e-2, rtol=5e-2)

    # Multi-tile / padded-batch path: B not a multiple of the tile.
    B2 = 300
    x2 = jax.random.normal(jax.random.PRNGKey(1), (B2, 16), jnp.float32)
    out2 = jax.block_until_ready(
        net_forward(x2, w1, b1, w2, b2, block_b=128))
    ref2 = _reference(x2, w1, b1, w2, b2)
    assert out2.shape == (B2, 10)
    assert jnp.allclose(out2, ref2, atol=1e-4, rtol=1e-4)

    print("KERNEL_OK")
</pallas_src>

<mosaic_0001>
module attributes {stable_mosaic.version = 11 : i64} {
  func.func @mlp_kernel(%arg0: i32, %arg1: memref<8x16xf32, #tpu.memory_space<vmem>>, %arg2: memref<16x32xbf16, #tpu.memory_space<vmem>>, %arg3: memref<1x32xf32, #tpu.memory_space<vmem>>, %arg4: memref<32x128xbf16, #tpu.memory_space<vmem>>, %arg5: memref<1x128xf32, #tpu.memory_space<vmem>>, %arg6: memref<8x128xf32, #tpu.memory_space<vmem>>) attributes {dimension_semantics = [#tpu.dimension_semantics<parallel>], iteration_bounds = array<i64: 1>, scalar_prefetch = 0 : i64, scratch_operands = 0 : i64, tpu.core_type = #tpu.core_type<tc>, window_params = [{transform_indices = @transform_0, window_bounds = array<i64: 8, 16>}, {pipeline_mode = #tpu.pipeline_mode<synchronous>, transform_indices = @transform_1, window_bounds = array<i64: 16, 32>}, {pipeline_mode = #tpu.pipeline_mode<synchronous>, transform_indices = @transform_2, window_bounds = array<i64: 1, 32>}, {pipeline_mode = #tpu.pipeline_mode<synchronous>, transform_indices = @transform_3, window_bounds = array<i64: 32, 128>}, {pipeline_mode = #tpu.pipeline_mode<synchronous>, transform_indices = @transform_4, window_bounds = array<i64: 1, 128>}, {transform_indices = @transform_5, window_bounds = array<i64: 8, 128>}]} {
    %c0 = arith.constant 0 : index
    %c0_0 = arith.constant 0 : index
    %0 = vector.load %arg1[%c0, %c0_0] : memref<8x16xf32, #tpu.memory_space<vmem>>, vector<8x16xf32>
    %1 = arith.truncf %0 : vector<8x16xf32> to vector<8x16xbf16>
    %c0_1 = arith.constant 0 : index
    %c0_2 = arith.constant 0 : index
    %2 = vector.load %arg2[%c0_1, %c0_2] : memref<16x32xbf16, #tpu.memory_space<vmem>>, vector<16x32xbf16>
    %cst = arith.constant dense<0.000000e+00> : vector<8x32xf32>
    %3 = tpu.matmul %1, %2, %cst {dimension_numbers = #tpu.dot_dimension_numbers<[1], [0], [0], [1], [0, 0, 1, 1], [], []>} : vector<8x16xbf16>, vector<16x32xbf16>, vector<8x32xf32> -> vector<8x32xf32>
    %c0_3 = arith.constant 0 : index
    %c0_4 = arith.constant 0 : index
    %4 = vector.load %arg3[%c0_3, %c0_4] : memref<1x32xf32, #tpu.memory_space<vmem>>, vector<1x32xf32>
    %5 = vector.broadcast %4 : vector<1x32xf32> to vector<8x32xf32>
    %6 = arith.addf %3, %5 : vector<8x32xf32>
    %cst_5 = arith.constant 0.000000e+00 : f32
    %7 = vector.broadcast %cst_5 : f32 to vector<8x32xf32>
    %8 = arith.maximumf %6, %7 : vector<8x32xf32>
    %9 = arith.truncf %8 : vector<8x32xf32> to vector<8x32xbf16>
    %c0_6 = arith.constant 0 : index
    %c0_7 = arith.constant 0 : index
    %10 = vector.load %arg4[%c0_6, %c0_7] : memref<32x128xbf16, #tpu.memory_space<vmem>>, vector<32x128xbf16>
    %cst_8 = arith.constant dense<0.000000e+00> : vector<8x128xf32>
    %11 = tpu.matmul %9, %10, %cst_8 {dimension_numbers = #tpu.dot_dimension_numbers<[1], [0], [0], [1], [0, 0, 1, 1], [], []>} : vector<8x32xbf16>, vector<32x128xbf16>, vector<8x128xf32> -> vector<8x128xf32>
    %c0_9 = arith.constant 0 : index
    %c0_10 = arith.constant 0 : index
    %12 = vector.load %arg5[%c0_9, %c0_10] : memref<1x128xf32, #tpu.memory_space<vmem>>, vector<1x128xf32>
    %13 = vector.broadcast %12 : vector<1x128xf32> to vector<8x128xf32>
    %14 = arith.addf %11, %13 : vector<8x128xf32>
    %c0_11 = arith.constant 0 : index
    %c0_12 = arith.constant 0 : index
    %15 = vector.load %arg6[%c0_11, %c0_12] : memref<8x128xf32, #tpu.memory_space<vmem>>, vector<8x128xf32>
    tpu.vector_store %arg6[%c0_11, %c0_12], %14 {strides = array<i32>} : memref<8x128xf32, #tpu.memory_space<vmem>>, vector<8x128xf32>,
    return
  }
  func.func @transform_0(%arg0: i32) -> (i32, i32) {
    %c0_i32 = arith.constant 0 : i32
    %c0_i32_0 = arith.constant 0 : i32
    return %arg0, %c0_i32 : i32, i32
  }
  func.func @transform_1(%arg0: i32) -> (i32, i32) {
    %c0_i32 = arith.constant 0 : i32
    %c0_i32_0 = arith.constant 0 : i32
    %c0_i32_1 = arith.constant 0 : i32
    return %c0_i32, %c0_i32_0 : i32, i32
  }
  func.func @transform_2(%arg0: i32) -> (i32, i32) {
    %c0_i32 = arith.constant 0 : i32
    %c0_i32_0 = arith.constant 0 : i32
    %c0_i32_1 = arith.constant 0 : i32
    return %c0_i32, %c0_i32_0 : i32, i32
  }
  func.func @transform_3(%arg0: i32) -> (i32, i32) {
    %c0_i32 = arith.constant 0 : i32
    %c0_i32_0 = arith.constant 0 : i32
    %c0_i32_1 = arith.constant 0 : i32
    return %c0_i32, %c0_i32_0 : i32, i32
  }
  func.func @transform_4(%arg0: i32) -> (i32, i32) {
    %c0_i32 = arith.constant 0 : i32
    %c0_i32_0 = arith.constant 0 : i32
    %c0_i32_1 = arith.constant 0 : i32
    return %c0_i32, %c0_i32_0 : i32, i32
  }
  func.func @transform_5(%arg0: i32) -> (i32, i32) {
    %c0_i32 = arith.constant 0 : i32
    %c0_i32_0 = arith.constant 0 : i32
    return %arg0, %c0_i32 : i32, i32
  }
}

</mosaic_0001>

<bundles_post_ra>
// kernel: tpu_custom_call.1
= control target key start
LH: loop header
LB: loop body
LE: loop exit
PB: predicated region body
PF: predicated region fallthrough
CT: control target
= control target key end

     0   :  { %10 = vsyncpa [#allocation3], 0  ;;  %s437_s0 = inlined_call_operand.hbm [shape: f32[8,16], index: 0, kind: input, shape index: {}]   ;;  %s438_s1 = inlined_call_operand.hbm [shape: bf16[16,32], index: 1, kind: input, shape index: {}]   ;;  %s439_s2 = inlined_call_operand.vmem [shape: f32[1,32], index: 2, kind: input, shape index: {}]   ;;  %s440_s3 = inlined_call_operand.hbm [shape: bf16[32,128], index: 3, kind: input, shape index: {}]   ;;  %s441_s4 = inlined_call_operand.vmem [shape: f32[1,128], index: 4, kind: input, shape index: {}]   ;;  %s442_s5 = inlined_call_operand.hbm [shape: f32[8,128], index: 5, kind: output, shape index: {}]  }
   0x1   :  { %11 = vsyncpa [#allocation6], 0 }
   0x2   :  { %12 = vsyncpa [#allocation4], 0  ;;  %s339_s18 = smov [#allocation5]   ;;  %s245_s22 = scalar_lea.hbm %s438_s1, 128 }
   0x3   :  { %s28_s19 = sshll.u32 %s339_s18, 4  ;;  %p246_p0 = scmp.ne.s32.totalorder %s438_s1, %s245_s22  ;;  %s29_s19 = int_to_ptr.vmem [resolvable:$true] %s28_s19 }
   0x4   :  { %p249_p1 = scmp.lt.u32.totalorder %s245_s22, %s438_s1 }
   0x6   :  { %p251_p2 = pnand %p249_p1, %p246_p0 }
   0x8   :  { %254 = shalt.err (!%p251_p2)
}
   0x9   :  { %s255_s27 = scalar_lea.vmem %s29_s19, 128  ;;  %p260_p4 = scmp.lt.s32.totalorder %s29_s19, %s29_s19 }
   0xa   :  { %p256_p3 = scmp.ne.s32.totalorder %s29_s19, %s255_s27  ;;  %p261_p5 = scmp.lt.s32.totalorder %s255_s27, %s255_s27 }
   0xc   :  { %p262_p6 = por %p261_p5, %p260_p4 }
   0xe   :  { %p263_p7 = pnand %p262_p6, %p256_p3 }
  0x10   :  { %266 = shalt.err (!%p263_p7)
}
  0x11   :  { %s340_s28 = smov 64   ;;  %s341_s29 = smov 4  }
  0x12   :  { %34 = dma.hbm_to_vmem [thread:$0]  %s438_s1, 128, %s29_s19, [#allocation6], %s340_s28, %s340_s28, %s341_s29  }
  0x13   :  { %s342_s7 = smov [#allocation2]   ;;  %s343_s9 = smov [#allocation7]  }
  0x14   :  { %s19_s8 = sshll.u32 %s342_s7, 4  ;;  %s42_s10 = sshll.u32 %s343_s9, 4  ;;  %s20_s8 = int_to_ptr.vmem [resolvable:$true] %s19_s8  ;;  %s43_s10 = int_to_ptr.vmem [resolvable:$true] %s42_s10 }
  0x15   :  { %s267_s13 = scalar_lea.hbm %s437_s0, 128 }
  0x16   :  { %p268_p8 = scmp.ne.s32.totalorder %s437_s0, %s267_s13  ;;  %p271_p9 = scmp.lt.u32.totalorder %s267_s13, %s437_s0 }
  0x18   :  { %p273_p10 = pnand %p271_p9, %p268_p8 }
  0x1a   :  { %276 = shalt.err (!%p273_p10)
}
  0x1b   :  { %s277_s1 = scalar_lea.vmem %s20_s8, 128  ;;  %p282_p12 = scmp.lt.s32.totalorder %s20_s8, %s20_s8 }
  0x1c   :  { %p278_p11 = scmp.ne.s32.totalorder %s20_s8, %s277_s1  ;;  %p283_p13 = scmp.lt.s32.totalorder %s277_s1, %s277_s1 }
  0x1e   :  { %p284_p0 = por %p283_p13, %p282_p12 }
  0x20   :  { %p285_p1 = pnand %p284_p0, %p278_p11 }
  0x22   :  { %288 = shalt.err (!%p285_p1)
}
  0x23   :  { %22 = dma.hbm_to_vmem [thread:$0]  %s437_s0, 128, %s20_s8, [#allocation3]  }
  0x24   :  { %s289_s22 = scalar_lea.hbm %s440_s3, 256 }
  0x25   :  { %p290_p2 = scmp.ne.s32.totalorder %s440_s3, %s289_s22  ;;  %p293_p3 = scmp.lt.u32.totalorder %s289_s22, %s440_s3 }
  0x27   :  { %p295_p4 = pnand %p293_p3, %p290_p2 }
  0x29   :  { %298 = shalt.err (!%p295_p4)
}
  0x2a   :  { %s299_s27 = scalar_lea.vmem %s43_s10, 256  ;;  %p304_p6 = scmp.lt.s32.totalorder %s43_s10, %s43_s10 }
  0x2b   :  { %p300_p5 = scmp.ne.s32.totalorder %s43_s10, %s299_s27  ;;  %p305_p7 = scmp.lt.s32.totalorder %s299_s27, %s299_s27 }
  0x2d   :  { %p306_p8 = por %p305_p7, %p304_p6 }
  0x2f   :  { %p307_p9 = pnand %p306_p8, %p300_p5 }
  0x31   :  { %310 = shalt.err (!%p307_p9)
}
  0x32   :  { %48 = dma.hbm_to_vmem [thread:$0]  %s440_s3, 256, %s43_s10, [#allocation6], %s340_s28, %s340_s28, %s341_s29  }
  0x33   :  { %333 = dma.done.wait [#allocation3], 128  }
  0x34   :  { %334 = vsyncadd [#allocation3], 4294967168 }
  0x35   :  { %335 = dma.done.wait [#allocation6], 384  }
  0x36   :  { %336 = vsyncadd [#allocation6], 4294966912  ;;  %v344_v0 = vmov 0.0   ;;  %vm345_vm0 = vmmov 0   ;;  %v242_v1 = vld [vmem:[#allocation5] sm:$0xff]   ;;  %v61_v2 = vld [vmem:[#allocation2] sm:$0xff] }
  0x37   :  { %220 = vmatprep.subr.bf16.mxu0 %v344_v0  ;;  %222 = vmatprep.mubr.msk.bf16.mxu0 %vm345_vm0, %v344_v0  ;;  %vm78_vm1 = vcmask 130048   ;;  %v62_v3 = vpack.c.bf16 %v61_v2, %v61_v2  ;;  %v243_v4 = vld [vmem:[#allocation7] sm:$0xff]   ;;  %v244_v5 = vld [vmem:[#allocation7 + $0x8] sm:$0xff]   ;;  %v208_v6 = vld [vmem:[%s439_s2] ss:$0 sm:$0xff]  ;;  %vm147_vm2 = vcmask 261120  }
  0x38   :  { %226 = vmatprep.subr.bf16.mxu1 %v344_v0  ;;  %230 = vmatprep.mubr.msk.bf16.mxu1 %vm345_vm0, %v344_v0  ;;  %v211_v14 = vld [vmem:[%s441_s4] ss:$0 sm:$0xff]  ;;  %s346_s7 = smov [#allocation8]  }
  0x39   :  { %221 = vmatpush3.bf16.msra.mxu0 %v242_v1  ;;  %227 = vmatpush3.bf16.msra.mxu1 %v243_v4  ;;  %s198_s8 = sshll.u32 %s346_s7, 4  ;;  %s199_s8 = int_to_ptr.vmem [resolvable:$true] %s198_s8 }
  0x3a   :  { %228 = vmatprep.subr.bf16.mxu1 %v344_v0  ;;  %s311_s2 = scalar_lea.vmem %s199_s8, 128  ;;  %p316_p11 = scmp.lt.s32.totalorder %s199_s8, %s199_s8 }
  0x3b   :  { %p312_p10 = scmp.ne.s32.totalorder %s199_s8, %s311_s2  ;;  %p317_p12 = scmp.lt.s32.totalorder %s311_s2, %s311_s2 }
  0x3c   :  { %223 = vmatmul.mubr.msk.bf16.vlgmr.msra.gmra.mrb[0].mxu0 %vm78_vm1, %v62_v3 }
  0x3d   :  { %229 = vmatpush3.bf16.msra.mxu1 %v244_v5  ;;  %p318_p13 = por %p317_p12, %p316_p11 }
  0x3f   :  { %p319_p0 = pnand %p318_p13, %p312_p10 }
 0x10f   :  { %v116_v7 = vpop.f32.mrb[0].mxu0 }
 0x110   :  { %v117_v8 = vadd.f32 %v208_v6, %v116_v7  ;;  %v224_v9 = vpop.f32.mrb[1].mxu0 }
 0x111   :  { %v119_v10 = vpop.f32.mrb[2].mxu0 }
 0x112   :  { %v122_v11 = vmax.f32 %v117_v8, 0.0  ;;  %v225_v12 = vpop.f32.mrb[3].mxu0 }
 0x114   :  { %v123_v13 = vpack.c.bf16 %v122_v11, %v122_v11 }
 0x116   :  { %231 = vmatmul.mubr.msk.bf16.vlgmr.msra.gmra.mrb[0].mxu1 %vm147_vm2, %v123_v13 }
 0x1e9   :  { %v185_v15 = vpop.f32.mrb[0].mxu1 }
 0x1ea   :  { %v186_v16 = vadd.f32 %v211_v14, %v185_v15  ;;  %v232_v17 = vpop.f32.mrb[1].mxu1 }
 0x1eb   :  { %v188_v18 = vpop.f32.mrb[2].mxu1 }
 0x1ec   :  { %191 = vst [vmem:[#allocation8] sm:$0xff] %v186_v16  ;;  %v233_v19 = vpop.f32.mrb[3].mxu1 }
 0x1ed   :  { %322 = shalt.err (!%p319_p0)
}
 0x1ee   :  { %s323_s4 = scalar_lea.hbm %s442_s5, 128 }
 0x1ef   :  { %p324_p1 = scmp.ne.s32.totalorder %s442_s5, %s323_s4  ;;  %p327_p2 = scmp.lt.u32.totalorder %s323_s4, %s442_s5 }
 0x1f1   :  { %p329_p3 = pnand %p327_p2, %p324_p1 }
 0x1f3   :  { %332 = shalt.err (!%p329_p3)
}
 0x1f4   :  { %201 = dma.vmem_to_hbm [thread:$0]  %s199_s8, 128, %s442_s5, [#allocation4]  }
 0x1f5   :  { %337 = dma.done.wait [#allocation4], 128  }
 0x1f6   :  { %338 = vsyncadd [#allocation4], 4294967168 }
 0x1f7   :  { %205 = vsyncpa [#allocation3], 1 }
 0x1f8   :  { %206 = vsyncpa [#allocation6], 1 }
 0x1f9   :  { %207 = vsyncpa [#allocation4], 1 }

</bundles_post_ra>
